<compile_context>
chip_gen: v6e
topology: v6e:2x2x1
jax: 0.10.0
libtpu: 0.0.40
codegen_flags: <defaults>
</compile_context>

<pallas_src>
import functools

import jax
import jax.numpy as jnp
from jax.experimental import pallas as pl
from jax.experimental.pallas import tpu as pltpu


def _round_up(n, m):
    return ((n + m - 1) // m) * m


def _ranker_kernel(xt_ref, w1_ref, b1_ref, w2_ref, b2_ref, w3_ref, b3_ref, o_ref,
                   *, chunk, use_bf16_matmul):
    """Fused transposed MLP over one batch tile, processed in `chunk`-lane slabs.

    xt_ref : (8, TB)  f32 (rows 3..7 zero)      w1_ref: (64, 8)    b1_ref: (64, 1)
    w2_ref : (32, 64)                           b2_ref: (32, 1)
    w3_ref : (1, 32) [bf16 path] or (32, 1) [f32 path]              b3_ref: (1, 1)
    o_ref  : (1, TB)  lane-dense output row
    """
    tb = o_ref.shape[-1]
    num_chunks = tb // chunk

    # Static chunk offsets -> zero-cost ref views, aligned vector loads, and live
    # intermediates bounded to one chunk (h1: 64xC, h2: 32xC) instead of the full tile.
    for c in range(num_chunks):
        c0 = c * chunk
        xs = xt_ref[:, c0:c0 + chunk]                             # (8, C) f32

        # ---- layer 1 (3 -> 64) -------------------------------------------------
        if use_bf16_matmul:
            # MXU: aligned (64,8)@(8,C), zero-padded K columns contribute nothing.
            h1 = jnp.dot(w1_ref[...], xs.astype(jnp.bfloat16),
                         preferred_element_type=jnp.float32)      # (64, C)
        else:
            # Exact-f32 path: K=3 is MXU-hostile -> 3 VPU broadcast mul/adds.
            h1 = (w1_ref[:, 0:1] * xs[0:1, :]
                  + w1_ref[:, 1:2] * xs[1:2, :]
                  + w1_ref[:, 2:3] * xs[2:3, :])                  # (64, C)
        h1 = jnp.maximum(h1 + b1_ref[...], 0.0)

        # ---- layer 2 (64 -> 32), MXU -------------------------------------------
        rhs = h1.astype(jnp.bfloat16) if use_bf16_matmul else h1
        h2 = jnp.dot(w2_ref[...], rhs, preferred_element_type=jnp.float32)
        h2 = jnp.maximum(h2 + b2_ref[...], 0.0)                   # (32, C)

        # ---- output layer (32 -> 1) --------------------------------------------
        if use_bf16_matmul:
            out_row = jnp.dot(w3_ref[...], h2.astype(jnp.bfloat16),
                              preferred_element_type=jnp.float32)  # (1, C) on MXU
        else:
            out_row = jnp.sum(h2 * w3_ref[...], axis=0, keepdims=True)  # VPU + XLU reduce

        o_ref[:, c0:c0 + chunk] = (out_row + b3_ref[...]).astype(o_ref.dtype)


def search_ranker_forward(x, w1, b1, w2, b2, w3, b3, *,
                          block_b=8192, use_bf16_matmul=False,
                          features_in_rows=False):
    """SearchRanker forward as a single batch-tiled Pallas TPU kernel.

    x: (B, 3) float32 (or (3, B)/(8, B) feature-major if features_in_rows=True).
    Weights stored (in, out); biases (1, out). Returns (B, 1).

    use_bf16_matmul=True runs all three layers on the MXU with bf16 inputs / f32
    accumulation. Recommended on v5e, v6e and v7x (avoids multi-pass f32 MXU
    emulation and moves work off the saturating VALU slot); tolerance ~5e-2 for
    features with modest dynamic range.
    """
    if features_in_rows:
        xf = x.astype(jnp.float32)
        assert xf.ndim == 2 and xf.shape[0] in (3, 8), xf.shape
        B = xf.shape[1]
    else:
        B = x.shape[0]

    if B == 0:
        return jnp.zeros((0, 1), jnp.float32)

    # ---- adaptive tiling: big tiles to amortize step overhead, >=2 tiles for v7x ----
    b_pad128 = _round_up(B, 128)
    num_tiles = -(-b_pad128 // block_b)                 # ceil
    if b_pad128 >= 2048 and num_tiles < 2:
        num_tiles = 2                                    # give both v7x TCs work
    tb = _round_up(-(-b_pad128 // num_tiles), 128)       # tile = multiple of 128 lanes
    b_pad = tb * num_tiles
    chunk = 256 if tb % 256 == 0 else 128                # inner lane-slab size

    # ---- layout plumbing (batch -> lane axis); feature rows padded 3 -> 8 (free) ----
    # TODO(synk): for peak v5e perf, feed features_in_rows=True from the producer so the
    # wrapper transpose HBM round trip disappears entirely.
    if features_in_rows:
        xt = jnp.pad(xf, ((0, 8 - xf.shape[0]), (0, b_pad - B)))          # (8, B_pad)
    else:
        xt = jnp.pad(x.astype(jnp.float32).T, ((0, 5), (0, b_pad - B)))   # (8, B_pad)

    w1t8 = jnp.pad(w1.T, ((0, 0), (0, 5)))               # (64, 8), K zero-padded
    b1c = jnp.reshape(b1, (64, 1))
    w2t = w2.T                                            # (32, 64)
    b2c = jnp.reshape(b2, (32, 1))
    b3c = jnp.reshape(b3, (1, 1))

    if use_bf16_matmul:                                   # pre-cast once (no per-step cast)
        w1k = w1t8.astype(jnp.bfloat16)
        w2k = w2t.astype(jnp.bfloat16)
        w3k = jnp.reshape(w3, (1, 32)).astype(jnp.bfloat16)   # lhs of (1,32)@(32,C)
        w3_block = (1, 32)
    else:
        w1k, w2k = w1t8, w2t
        w3k = jnp.reshape(w3, (32, 1))                    # column for VPU reduce
        w3_block = (32, 1)

    # Constant index_map -> weights stay resident in VMEM (no per-step re-DMA).
    const = lambda shape: pl.BlockSpec(shape, lambda i: (0, 0))

    flops = 2 * b_pad * (3 * 64 + 64 * 32 + 32)
    cost = pl.CostEstimate(flops=flops, transcendentals=0,
                           bytes_accessed=b_pad * (8 * 4 + 4) + 8 * 1024)

    out = pl.pallas_call(
        functools.partial(_ranker_kernel, chunk=chunk,
                          use_bf16_matmul=use_bf16_matmul),
        out_shape=jax.ShapeDtypeStruct((1, b_pad), jnp.float32),
        grid=(num_tiles,),
        in_specs=[
            pl.BlockSpec((8, tb), lambda i: (0, i)),      # lane-dense x tile
            const((64, 8)), const((64, 1)),
            const((32, 64)), const((32, 1)),
            const(w3_block), const((1, 1)),
        ],
        out_specs=pl.BlockSpec((1, tb), lambda i: (0, i)),  # lane-dense output tile
        compiler_params=pltpu.CompilerParams(
            dimension_semantics=("parallel",),            # megacore sharding on v7x
            vmem_limit_bytes=32 * 1024 * 1024),
        cost_estimate=cost,
    )(xt, w1k, b1c, w2k, b2c, w3k, b3c)

    # Drop padded columns; return in the PyTorch (B, 1) shape.
    return out[0, :B].reshape(B, 1)


def init_params(key):
    """Deterministic init mimicking torch.nn.Linear default (uniform +-1/sqrt(fan_in)).

    Weights stored as (in_features, out_features); biases as (1, out_features).
    """
    k1, k2, k3, k4, k5, k6 = jax.random.split(key, 6)

    def lin(kw, kb, fan_in, fan_out):
        bound = 1.0 / jnp.sqrt(jnp.float32(fan_in))
        w = jax.random.uniform(kw, (fan_in, fan_out), jnp.float32, -bound, bound)
        b = jax.random.uniform(kb, (1, fan_out), jnp.float32, -bound, bound)
        return w, b

    w1, b1 = lin(k1, k2, 3, 64)
    w2, b2 = lin(k3, k4, 64, 32)
    w3, b3 = lin(k5, k6, 32, 1)
    return w1, b1, w2, b2, w3, b3


def reference_forward(x, w1, b1, w2, b2, w3, b3):
    h1 = jnp.maximum(x @ w1 + b1, 0.0)
    h2 = jnp.maximum(h1 @ w2 + b2, 0.0)
    return h2 @ w3 + b3


if __name__ == "__main__":
    key = jax.random.PRNGKey(0)
    kx, kx2, kp = jax.random.split(key, 3)
    params = init_params(kp)

    # batch of 8 search results, 3 features each:
    # [distance_score, tfidf_score, filename_length]
    x = jax.random.normal(kx, (8, 3), dtype=jnp.float32)
    ref = reference_forward(x, *params)

    # Exact-math path (f32, VPU layer 1 + MXU layer 2): tight tolerance.
    out_f32 = jax.block_until_ready(search_ranker_forward(x, *params))
    assert out_f32.shape == (8, 1), out_f32.shape
    assert jnp.allclose(out_f32, ref, atol=1e-5, rtol=1e-5), "f32 path mismatch"

    # Fast path (all layers on MXU, bf16 inputs / f32 accumulation): relaxed tolerance.
    out_bf16 = jax.block_until_ready(
        search_ranker_forward(x, *params, use_bf16_matmul=True))
    assert out_bf16.shape == (8, 1), out_bf16.shape
    assert jnp.allclose(out_bf16, ref, atol=5e-2, rtol=5e-2), "bf16 path mismatch"

    # Feature-major input path (skips the wrapper transpose).
    out_fm = jax.block_until_ready(
        search_ranker_forward(x.T, *params, features_in_rows=True))
    assert jnp.allclose(out_fm, ref, atol=1e-5, rtol=1e-5), "feature-major path mismatch"

    # Mid-sized batch: exercises >=2 grid tiles (megacore) and the inner chunk loop.
    x_big = jax.random.normal(kx2, (2500, 3), dtype=jnp.float32)
    ref_big = reference_forward(x_big, *params)
    out_big = jax.block_until_ready(search_ranker_forward(x_big, *params))
    assert out_big.shape == (2500, 1), out_big.shape
    assert jnp.allclose(out_big, ref_big, atol=1e-5, rtol=1e-5), "multi-tile path mismatch"

    print("KERNEL_OK")
</pallas_src>

<mosaic_0001>
module attributes {stable_mosaic.version = 11 : i64} {
  func.func @_ranker_kernel(%arg0: i32, %arg1: memref<8x128xf32, #tpu.memory_space<vmem>>, %arg2: memref<64x8xf32, #tpu.memory_space<vmem>>, %arg3: memref<64x1xf32, #tpu.memory_space<vmem>>, %arg4: memref<32x64xf32, #tpu.memory_space<vmem>>, %arg5: memref<32x1xf32, #tpu.memory_space<vmem>>, %arg6: memref<32x1xf32, #tpu.memory_space<vmem>>, %arg7: memref<1x1xf32, #tpu.memory_space<vmem>>, %arg8: memref<1x128xf32, #tpu.memory_space<vmem>>) attributes {dimension_semantics = [#tpu.dimension_semantics<parallel>], iteration_bounds = array<i64: 1>, scalar_prefetch = 0 : i64, scratch_operands = 0 : i64, tpu.core_type = #tpu.core_type<tc>, window_params = [{transform_indices = @transform_0, window_bounds = array<i64: 8, 128>}, {pipeline_mode = #tpu.pipeline_mode<synchronous>, transform_indices = @transform_1, window_bounds = array<i64: 64, 8>}, {pipeline_mode = #tpu.pipeline_mode<synchronous>, transform_indices = @transform_2, window_bounds = array<i64: 64, 1>}, {pipeline_mode = #tpu.pipeline_mode<synchronous>, transform_indices = @transform_3, window_bounds = array<i64: 32, 64>}, {pipeline_mode = #tpu.pipeline_mode<synchronous>, transform_indices = @transform_4, window_bounds = array<i64: 32, 1>}, {pipeline_mode = #tpu.pipeline_mode<synchronous>, transform_indices = @transform_5, window_bounds = array<i64: 32, 1>}, {pipeline_mode = #tpu.pipeline_mode<synchronous>, transform_indices = @transform_6, window_bounds = array<i64: 1, 1>}, {transform_indices = @transform_7, window_bounds = array<i64: 1, 128>}]} {
    %c0 = arith.constant 0 : index
    %c0_0 = arith.constant 0 : index
    %0 = vector.load %arg1[%c0, %c0_0] : memref<8x128xf32, #tpu.memory_space<vmem>>, vector<8x128xf32>
    %c0_1 = arith.constant 0 : index
    %c0_2 = arith.constant 0 : index
    %1 = vector.load %arg2[%c0_1, %c0_2] : memref<64x8xf32, #tpu.memory_space<vmem>>, vector<64x1xf32>
    %2 = vector.extract_strided_slice %0 {offsets = [0, 0], sizes = [1, 128], strides = [1, 1]} : vector<8x128xf32> to vector<1x128xf32>
    %3 = vector.broadcast %1 : vector<64x1xf32> to vector<64x128xf32>
    %4 = vector.broadcast %2 : vector<1x128xf32> to vector<64x128xf32>
    %5 = arith.mulf %3, %4 : vector<64x128xf32>
    %c0_3 = arith.constant 0 : index
    %c1 = arith.constant 1 : index
    %6 = vector.load %arg2[%c0_3, %c1] : memref<64x8xf32, #tpu.memory_space<vmem>>, vector<64x1xf32>
    %7 = vector.extract_strided_slice %0 {offsets = [1, 0], sizes = [1, 128], strides = [1, 1]} : vector<8x128xf32> to vector<1x128xf32>
    %8 = vector.broadcast %6 : vector<64x1xf32> to vector<64x128xf32>
    %9 = vector.broadcast %7 : vector<1x128xf32> to vector<64x128xf32>
    %10 = arith.mulf %8, %9 : vector<64x128xf32>
    %11 = arith.addf %5, %10 : vector<64x128xf32>
    %c0_4 = arith.constant 0 : index
    %c2 = arith.constant 2 : index
    %12 = vector.load %arg2[%c0_4, %c2] : memref<64x8xf32, #tpu.memory_space<vmem>>, vector<64x1xf32>
    %13 = vector.extract_strided_slice %0 {offsets = [2, 0], sizes = [1, 128], strides = [1, 1]} : vector<8x128xf32> to vector<1x128xf32>
    %14 = vector.broadcast %12 : vector<64x1xf32> to vector<64x128xf32>
    %15 = vector.broadcast %13 : vector<1x128xf32> to vector<64x128xf32>
    %16 = arith.mulf %14, %15 : vector<64x128xf32>
    %17 = arith.addf %11, %16 : vector<64x128xf32>
    %c0_5 = arith.constant 0 : index
    %c0_6 = arith.constant 0 : index
    %18 = vector.load %arg3[%c0_5, %c0_6] : memref<64x1xf32, #tpu.memory_space<vmem>>, vector<64x1xf32>
    %19 = vector.broadcast %18 : vector<64x1xf32> to vector<64x128xf32>
    %20 = arith.addf %17, %19 : vector<64x128xf32>
    %cst = arith.constant 0.000000e+00 : f32
    %21 = vector.broadcast %cst : f32 to vector<64x128xf32>
    %22 = arith.maximumf %20, %21 : vector<64x128xf32>
    %c0_7 = arith.constant 0 : index
    %c0_8 = arith.constant 0 : index
    %23 = vector.load %arg4[%c0_7, %c0_8] : memref<32x64xf32, #tpu.memory_space<vmem>>, vector<32x64xf32>
    %cst_9 = arith.constant dense<0.000000e+00> : vector<32x128xf32>
    %24 = tpu.matmul %23, %22, %cst_9 {dimension_numbers = #tpu.dot_dimension_numbers<[1], [0], [0], [1], [0, 0, 1, 1], [], []>} : vector<32x64xf32>, vector<64x128xf32>, vector<32x128xf32> -> vector<32x128xf32>
    %c0_10 = arith.constant 0 : index
    %c0_11 = arith.constant 0 : index
    %25 = vector.load %arg5[%c0_10, %c0_11] : memref<32x1xf32, #tpu.memory_space<vmem>>, vector<32x1xf32>
    %26 = vector.broadcast %25 : vector<32x1xf32> to vector<32x128xf32>
    %27 = arith.addf %24, %26 : vector<32x128xf32>
    %cst_12 = arith.constant 0.000000e+00 : f32
    %28 = vector.broadcast %cst_12 : f32 to vector<32x128xf32>
    %29 = arith.maximumf %27, %28 : vector<32x128xf32>
    %c0_13 = arith.constant 0 : index
    %c0_14 = arith.constant 0 : index
    %30 = vector.load %arg6[%c0_13, %c0_14] : memref<32x1xf32, #tpu.memory_space<vmem>>, vector<32x1xf32>
    %31 = vector.broadcast %30 : vector<32x1xf32> to vector<32x128xf32>
    %32 = arith.mulf %29, %31 : vector<32x128xf32>
    %cst_15 = arith.constant dense<0.000000e+00> : vector<128xf32>
    %33 = vector.multi_reduction <add>, %32, %cst_15 [0] : vector<32x128xf32> to vector<128xf32>
    %34 = vector.shape_cast %33 : vector<128xf32> to vector<1x128xf32>
    %c0_16 = arith.constant 0 : index
    %c0_17 = arith.constant 0 : index
    %35 = vector.load %arg7[%c0_16, %c0_17] : memref<1x1xf32, #tpu.memory_space<vmem>>, vector<1x1xf32>
    %36 = vector.broadcast %35 : vector<1x1xf32> to vector<1x128xf32>
    %37 = arith.addf %34, %36 : vector<1x128xf32>
    %c0_18 = arith.constant 0 : index
    %c0_19 = arith.constant 0 : index
    %38 = vector.load %arg8[%c0_18, %c0_19] : memref<1x128xf32, #tpu.memory_space<vmem>>, vector<1x128xf32>
    tpu.vector_store %arg8[%c0_18, %c0_19], %37 {strides = array<i32>} : memref<1x128xf32, #tpu.memory_space<vmem>>, vector<1x128xf32>,
    return
  }
  func.func @transform_0(%arg0: i32) -> (i32, i32) {
    %c0_i32 = arith.constant 0 : i32
    %c0_i32_0 = arith.constant 0 : i32
    return %c0_i32, %arg0 : i32, i32
  }
  func.func @transform_1(%arg0: i32) -> (i32, i32) {
    %c0_i32 = arith.constant 0 : i32
    %c0_i32_0 = arith.constant 0 : i32
    %c0_i32_1 = arith.constant 0 : i32
    return %c0_i32, %c0_i32_0 : i32, i32
  }
  func.func @transform_2(%arg0: i32) -> (i32, i32) {
    %c0_i32 = arith.constant 0 : i32
    %c0_i32_0 = arith.constant 0 : i32
    %c0_i32_1 = arith.constant 0 : i32
    return %c0_i32, %c0_i32_0 : i32, i32
  }
  func.func @transform_3(%arg0: i32) -> (i32, i32) {
    %c0_i32 = arith.constant 0 : i32
    %c0_i32_0 = arith.constant 0 : i32
    %c0_i32_1 = arith.constant 0 : i32
    return %c0_i32, %c0_i32_0 : i32, i32
  }
  func.func @transform_4(%arg0: i32) -> (i32, i32) {
    %c0_i32 = arith.constant 0 : i32
    %c0_i32_0 = arith.constant 0 : i32
    %c0_i32_1 = arith.constant 0 : i32
    return %c0_i32, %c0_i32_0 : i32, i32
  }
  func.func @transform_5(%arg0: i32) -> (i32, i32) {
    %c0_i32 = arith.constant 0 : i32
    %c0_i32_0 = arith.constant 0 : i32
    %c0_i32_1 = arith.constant 0 : i32
    return %c0_i32, %c0_i32_0 : i32, i32
  }
  func.func @transform_6(%arg0: i32) -> (i32, i32) {
    %c0_i32 = arith.constant 0 : i32
    %c0_i32_0 = arith.constant 0 : i32
    %c0_i32_1 = arith.constant 0 : i32
    return %c0_i32, %c0_i32_0 : i32, i32
  }
  func.func @transform_7(%arg0: i32) -> (i32, i32) {
    %c0_i32 = arith.constant 0 : i32
    %c0_i32_0 = arith.constant 0 : i32
    return %c0_i32, %arg0 : i32, i32
  }
}

</mosaic_0001>

<bundles_post_ra>
// kernel: tpu_custom_call.1
= control target key start
LH: loop header
LB: loop body
LE: loop exit
PB: predicated region body
PF: predicated region fallthrough
CT: control target
= control target key end

     0   :  { %s748_s0 = inlined_call_operand.vmem [shape: f32[8,128], index: 0, kind: input, shape index: {}]   ;;  %s749_s1 = inlined_call_operand.vmem [shape: f32[64,8], index: 1, kind: input, shape index: {}]   ;;  %s750_s2 = inlined_call_operand.vmem [shape: f32[64,1], index: 2, kind: input, shape index: {}]   ;;  %s751_s3 = inlined_call_operand.vmem [shape: f32[32,64], index: 3, kind: input, shape index: {}]   ;;  %s752_s4 = inlined_call_operand.vmem [shape: f32[32,1], index: 4, kind: input, shape index: {}]   ;;  %s753_s5 = inlined_call_operand.vmem [shape: f32[32,1], index: 5, kind: input, shape index: {}]   ;;  %s754_s6 = inlined_call_operand.<no memory space> [shape: f32[1,1], index: 6, kind: input, shape index: {}]   ;;  %s755_s7 = inlined_call_operand.hbm [shape: f32[1,128], index: 7, kind: output, shape index: {}]  }
   0x1   :  { %v12_v0 = vstv %s754_s6 }
   0x2   :  { %13 = vst [vmem:[#allocation2] sm:$0x1] %v12_v0 }
   0x3   :  { %v36_v1 = vld [vmem:[%s749_s1 + $0x30] sm:$0xff]  ;;  %v35_v2 = vld [vmem:[%s749_s1 + $0x28] sm:$0xff]  ;;  %v551_v3 = vmov 2   ;;  %v552_v4 = vmov 0   ;;  %v37_v5 = vld [vmem:[%s749_s1 + $0x38] sm:$0xff]  ;;  %v553_v6 = vmov 1  }
   0x4   :  { %515 = vset.pattern.permute.xlu0 %v551_v3  ;;  %509 = vset.pattern.permute.xlu1 %v552_v4  ;;  %v33_v7 = vld [vmem:[%s749_s1 + $0x18] sm:$0xff] }
   0x5   :  { %70 = vperm.xlu1 %509, %v36_v1   ;;  %163 = vperm.xlu0 %515, %v35_v2  }
   0x9   :  { %510 = vset.pattern.permute.xlu1 %v553_v6  ;;  %516 = vset.pattern.permute.xlu0 %v553_v6 }
   0xa   :  { %115 = vperm.xlu1 %510, %v36_v1   ;;  %119 = vperm.xlu0 %516, %v37_v5  }
   0xb   :  { %14 = vsyncpa [#allocation4], 0  ;;  %v31_v8 = vld [vmem:[%s749_s1 + $0x8] sm:$0xff]  ;;  %v34_v9 = vld [vmem:[%s749_s1 + $0x20] sm:$0xff]  ;;  %vm286_vm0 = vcmask 523264   ;;  %v78_v35 = vlaneseq }
   0xc   :  { %v201_v10 = vld [vmem:[%s750_s2 + $0x38] sm:$0xff]  ;;  %v32_v11 = vld [vmem:[%s749_s1 + $0x10] sm:$0xff]  ;;  %v199_v12 = vld [vmem:[%s750_s2 + $0x28] sm:$0xff] }
   0xd   :  { %v30_v13 = vld [vmem:[%s749_s1] sm:$0xff]  ;;  %v197_v14 = vld [vmem:[%s750_s2 + $0x18] sm:$0xff]  ;;  %v200_v15 = vld [vmem:[%s750_s2 + $0x30] sm:$0xff]  ;;  %v692_v38 = vshrl.u32 %v78_v35, 7 }
   0xe   :  { %511 = vset.pattern.permute.xlu1 %v551_v3  ;;  %103 = vperm.xlu0 %516, %v33_v7   ;;  %v196_v16 = vld [vmem:[%s750_s2 + $0x10] sm:$0xff]  ;;  %v194_v17 = vld [vmem:[%s750_s2] sm:$0xff]  ;;  %v263_v18 = vld [vmem:[%s752_s4 + $0x8] sm:$0xff] }
   0xf   :  { %171 = vperm.xlu1 %511, %v37_v5   ;;  %v265_v19 = vld [vmem:[%s752_s4 + $0x18] sm:$0xff]  ;;  %v389_v20 = vld [vmem:[%s753_s5 + $0x8] sm:$0xff]  ;;  %v198_v22 = vld [vmem:[%s750_s2 + $0x20] sm:$0xff]  ;;  %v80_v40 = vsub.s32 0, %v692_v38  ;;  %v124_v41 = vsub.s32 1, %v692_v38  ;;  %v176_v46 = vsub.s32 2, %v692_v38 }
  0x10   :  { %v391_v21 = vld [vmem:[%s753_s5 + $0x18] sm:$0xff]  ;;  %v195_v23 = vld [vmem:[%s750_s2 + $0x8] sm:$0xff]  ;;  %v262_v24 = vld [vmem:[%s752_s4] sm:$0xff] }
  0x11   :  { %v258_v25 = vld [vmem:[%s751_s3] sm:$0xff]  ;;  %v260_v26 = vld [vmem:[%s751_s3 + $0x10] sm:$0xff] }
  0x12   :  { %95 = vperm.xlu0 %516, %v31_v8   ;;  %483 = vmatprep.mubr.msk.f32.mxu0 %vm286_vm0, %v258_v25  ;;  %v264_v27 = vld [vmem:[%s752_s4 + $0x10] sm:$0xff]  ;;  %v388_v28 = vld [vmem:[%s753_s5] sm:$0xff] }
  0x13   :  { %512 = vset.pattern.permute.xlu1 %v553_v6  ;;  %486 = vmatprep.mubr.msk.f32.mxu1 %vm286_vm0, %v260_v26  ;;  %v390_v29 = vld [vmem:[%s753_s5 + $0x10] sm:$0xff]  ;;  %v425_v30 = vld [vmem:[#allocation2] sm:$0x1] }
  0x14   :  { %111 = vperm.xlu1 %512, %v35_v2   ;;  %v29_v43 = vld [vmem:[%s748_s0] sm:$0xff] }
  0x15   :  { %v703_v45 = vrot.slane %v29_v43, %v80_v40  ;;  %v706_v47 = vrot.slane %v29_v43, %v124_v41  ;;  %v710_v51 = vrot.slane %v29_v43, %v176_v46 }
  0x16   :  { %523 = vset.pattern.permute.xlu0 %v552_v4 }
  0x17   :  { %75 = vperm.xlu0 %523, %v37_v5  }
  0x18   :  { %513 = vset.pattern.permute.xlu1 %v551_v3 }
  0x19   :  { %167 = vperm.xlu1 %513, %v36_v1  }
  0x1b   :  { %65 = vperm.xlu0 %523, %v35_v2  }
  0x1d   :  { %514 = vset.pattern.permute.xlu1 %v553_v6 }
  0x1e   :  { %107 = vperm.xlu1 %514, %v34_v9  }
  0x1f   :  { %60 = vperm.xlu0 %523, %v34_v9  }
  0x22   :  { %517 = vset.pattern.permute.xlu1 %v552_v4 }
  0x23   :  { %239 = vperm.xlu1 %517, %v201_v10   ;;  %50 = vperm.xlu0 %523, %v32_v11  }
  0x27   :  { %55 = vperm.xlu1 %517, %v33_v7   ;;  %229 = vperm.xlu0 %523, %v199_v12  }
  0x2b   :  { %518 = vset.pattern.permute.xlu1 %v551_v3  ;;  %40 = vperm.xlu0 %523, %v30_v13  }
  0x2c   :  { %159 = vperm.xlu1 %518, %v34_v9  }
  0x2f   :  { %219 = vperm.xlu0 %523, %v197_v14  }
  0x30   :  { %519 = vset.pattern.permute.xlu1 %v552_v4 }
  0x31   :  { %234 = vperm.xlu1 %519, %v200_v15  }
  0x33   :  { %214 = vperm.xlu0 %523, %v196_v16  }
  0x35   :  { %520 = vset.pattern.permute.xlu1 %v553_v6 }
  0x36   :  { %99 = vperm.xlu1 %520, %v32_v11  }
  0x37   :  { %204 = vperm.xlu0 %523, %v194_v17  }
  0x3a   :  { %521 = vset.pattern.permute.xlu1 %v551_v3 }
  0x3b   :  { %155 = vperm.xlu1 %521, %v33_v7   ;;  %273 = vperm.xlu0 %523, %v263_v18  }
  0x3f   :  { %522 = vset.pattern.permute.xlu1 %v552_v4  ;;  %283 = vperm.xlu0 %523, %v265_v19  }
  0x40   :  { %45 = vperm.xlu1 %522, %v31_v8  }
  0x43   :  { %399 = vperm.xlu0 %523, %v389_v20  }
  0x44   :  { %524 = vset.pattern.permute.xlu1 %v551_v3 }
  0x45   :  { %151 = vperm.xlu1 %524, %v32_v11  }
  0x47   :  { %409 = vperm.xlu0 %523, %v391_v21  }
  0x49   :  { %525 = vset.pattern.permute.xlu1 %v552_v4 }
  0x4a   :  { %224 = vperm.xlu1 %525, %v198_v22  }
  0x4e   :  { %526 = vset.pattern.permute.xlu1 %v553_v6 }
  0x4f   :  { %91 = vperm.xlu1 %526, %v30_v13  }
  0x53   :  { %527 = vset.pattern.permute.xlu1 %v551_v3 }
  0x54   :  { %147 = vperm.xlu1 %527, %v31_v8  }
  0x58   :  { %143 = vperm.xlu1 %527, %v30_v13  }
  0x5c   :  { %528 = vset.pattern.permute.xlu1 %v552_v4 }
  0x5d   :  { %209 = vperm.xlu1 %528, %v195_v23  }
  0x61   :  { %268 = vperm.xlu1 %528, %v262_v24  }
  0x65   :  { %278 = vperm.xlu1 %528, %v264_v27  }
  0x69   :  { %394 = vperm.xlu1 %528, %v388_v28  }
  0x6d   :  { %404 = vperm.xlu1 %528, %v390_v29  }
  0x71   :  { %428 = vperm.xlu1 %528, %v425_v30  }
  0x80   :  { %v71_v31 = vpop.permute.xlu1 %70  ;;  %v164_v32 = vpop.permute.xlu0 %163 }
  0x81   :  { %v88_v2 = vmul.f32 %v703_v45, %v71_v31  ;;  %v183_v3 = vmul.f32 %v710_v51, %v164_v32 }
  0x85   :  { %v116_v33 = vpop.permute.xlu1 %115  ;;  %v120_v34 = vpop.permute.xlu0 %119 }
  0x86   :  { %v133_v49 = vmul.f32 %v706_v47, %v120_v34  ;;  %v132_v0 = vmul.f32 %v706_v47, %v116_v33 }
  0x88   :  { %v140_v7 = vadd.f32 %v132_v0, %v88_v2 }
  0x89   :  { %v104_v36 = vpop.permute.xlu0 %103 }
  0x8a   :  { %v172_v37 = vpop.permute.xlu1 %171  ;;  %v129_v20 = vmul.f32 %v706_v47, %v104_v36 }
  0x8b   :  { %v185_v55 = vmul.f32 %v710_v51, %v172_v37 }
  0x8d   :  { %v694_v39 = vpop.permute.xlu0 %95 }
  0x8f   :  { %v112_v42 = vpop.permute.xlu1 %111 }
  0x90   :  { %v131_v1 = vmul.f32 %v706_v47, %v112_v42 }
  0x92   :  { %v76_v44 = vpop.permute.xlu0 %75 }
  0x93   :  { %v89_v50 = vmul.f32 %v703_v45, %v76_v44 }
  0x94   :  { %v168_v48 = vpop.permute.xlu1 %167 }
  0x95   :  { %v141_v53 = vadd.f32 %v133_v49, %v89_v50  ;;  %v184_v4 = vmul.f32 %v710_v51, %v168_v48 }
  0x96   :  { %v66_v52 = vpop.permute.xlu0 %65 }
  0x97   :  { %v193_v56 = vadd.f32 %v185_v55, %v141_v53  ;;  %v87_v62 = vmul.f32 %v703_v45, %v66_v52  ;;  %v192_v10 = vadd.f32 %v184_v4, %v140_v7 }
  0x99   :  { %v108_v54 = vpop.permute.xlu1 %107  ;;  %v139_v5 = vadd.f32 %v131_v1, %v87_v62 }
  0x9a   :  { %v61_v57 = vpop.permute.xlu0 %60  ;;  %v130_v22 = vmul.f32 %v706_v47, %v108_v54 }
  0x9b   :  { %v191_v9 = vadd.f32 %v183_v3, %v139_v5  ;;  %v86_v23 = vmul.f32 %v703_v45, %v61_v57 }
  0x9d   :  { %v138_v32 = vadd.f32 %v130_v22, %v86_v23 }
  0x9e   :  { %v240_v58 = vpop.permute.xlu1 %239  ;;  %v51_v63 = vpop.permute.xlu0 %50 }
  0x9f   :  { %v249_v59 = vadd.f32 %v240_v58, %v193_v56  ;;  %v84_v24 = vmul.f32 %v703_v45, %v51_v63  ;;  %v127_v56 = vmul.f32 %v706_v47, %v694_v39  ;;  %v259_v39 = vld [vmem:[%s751_s3 + $0x8] sm:$0xff] }
  0xa1   :  { %v257_v60 = vmax.f32 %v249_v59, 0.0 }
  0xa2   :  { %v56_v61 = vpop.permute.xlu1 %55  ;;  %v230_v8 = vpop.permute.xlu0 %229 }
  0xa3   :  { %467 = vmatprep.subr.mxu0 %v257_v60  ;;  %489 = vmatprep.subr.mxu1 %v257_v60  ;;  %v247_v12 = vadd.f32 %v230_v8, %v191_v9  ;;  %v85_v21 = vmul.f32 %v703_v45, %v56_v61 }
  0xa4   :  { %468 = vmatpush3.msra.mxu0 %v257_v60  ;;  %497 = vmatpush3.msra.mxu1 %v257_v60 }
  0xa5   :  { %v255_v15 = vmax.f32 %v247_v12, 0.0  ;;  %v137_v27 = vadd.f32 %v129_v20, %v85_v21 }
  0xa6   :  { %v41_v18 = vpop.permute.xlu0 %40 }
  0xa7   :  { %v160_v6 = vpop.permute.xlu1 %159  ;;  %v82_v55 = vmul.f32 %v703_v45, %v41_v18 }
  0xa8   :  { %v182_v28 = vmul.f32 %v710_v51, %v160_v6 }
  0xaa   :  { %v220_v30 = vpop.permute.xlu0 %219  ;;  %v190_v36 = vadd.f32 %v182_v28, %v138_v32 }
  0xac   :  { %v235_v11 = vpop.permute.xlu1 %234 }
  0xad   :  { %v248_v13 = vadd.f32 %v235_v11, %v192_v10 }
  0xae   :  { %v215_v43 = vpop.permute.xlu0 %214 }
  0xaf   :  { %v256_v14 = vmax.f32 %v248_v13, 0.0 }
  0xb1   :  { %v100_v16 = vpop.permute.xlu1 %99  ;;  %469 = vmatprep.subr.mxu0 %v256_v14  ;;  %490 = vmatprep.subr.mxu1 %v256_v14 }
  0xb2   :  { %470 = vmatpush3.msra.mxu0 %v256_v14  ;;  %498 = vmatpush3.msra.mxu1 %v256_v14  ;;  %v128_v25 = vmul.f32 %v706_v47, %v100_v16  ;;  %v205_v0 = vpop.permute.xlu0 %204 }
  0xb3   :  { %471 = vmatprep.subr.mxu0 %v255_v15  ;;  %491 = vmatprep.subr.mxu1 %v255_v15 }
  0xb4   :  { %472 = vmatpush3.msra.mxu0 %v255_v15  ;;  %499 = vmatpush3.msra.mxu1 %v255_v15  ;;  %v136_v33 = vadd.f32 %v128_v25, %v84_v24 }
  0xb6   :  { %v156_v17 = vpop.permute.xlu1 %155 }
  0xb7   :  { %v181_v26 = vmul.f32 %v710_v51, %v156_v17 }
  0xb9   :  { %v189_v34 = vadd.f32 %v181_v26, %v137_v27 }
  0xbb   :  { %v46_v19 = vpop.permute.xlu1 %45  ;;  %v245_v41 = vadd.f32 %v220_v30, %v189_v34 }
  0xbc   :  { %v83_v54 = vmul.f32 %v703_v45, %v46_v19  ;;  %v261_v45 = vld [vmem:[%s751_s3 + $0x18] sm:$0xff]  ;;  %s554_s3 = smov [#allocation3]  }
  0xbd   :  { %v253_v48 = vmax.f32 %v245_v41, 0.0  ;;  %s443_s30 = sshll.u32 %s554_s3, 4  ;;  %s444_s30 = int_to_ptr.vmem [resolvable:$true] %s443_s30 }
  0xbe   :  { %v135_v61 = vadd.f32 %v127_v56, %v83_v54  ;;  %s529_s8 = scalar_lea.vmem %s444_s30, 16  ;;  %s533_s6 = scalar_lea.vmem %s444_s30, 32 }
  0xbf   :  { %p530_p0 = scmp.ne.s32.totalorder %s444_s30, %s529_s8  ;;  %p534_p1 = scmp.lt.s32.totalorder %s444_s30, %s444_s30 }
  0xc0   :  { %v152_v29 = vpop.permute.xlu1 %151  ;;  %p535_p2 = scmp.lt.s32.totalorder %s533_s6, %s529_s8 }
  0xc1   :  { %v180_v31 = vmul.f32 %v710_v51, %v152_v29 }
  0xc2   :  { %p536_p3 = por %p535_p2, %p534_p1 }
  0xc3   :  { %v188_v35 = vadd.f32 %v180_v31, %v136_v33 }
  0xc4   :  { %p537_p4 = pnand %p536_p3, %p530_p0 }
  0xc5   :  { %v225_v37 = vpop.permute.xlu1 %224  ;;  %v244_v44 = vadd.f32 %v215_v43, %v188_v35 }
  0xc6   :  { %v246_v42 = vadd.f32 %v225_v37, %v190_v36 }
  0xc7   :  { %v252_v50 = vmax.f32 %v244_v44, 0.0 }
  0xc8   :  { %v254_v46 = vmax.f32 %v246_v42, 0.0 }
  0xca   :  { %v92_v49 = vpop.permute.xlu1 %91  ;;  %473 = vmatprep.subr.mxu0 %v254_v46  ;;  %492 = vmatprep.subr.mxu1 %v254_v46 }
  0xcb   :  { %474 = vmatpush3.msra.mxu0 %v254_v46  ;;  %500 = vmatpush3.msra.mxu1 %v254_v46  ;;  %v126_v53 = vmul.f32 %v706_v47, %v92_v49 }
  0xcc   :  { %475 = vmatprep.subr.mxu0 %v253_v48  ;;  %493 = vmatprep.subr.mxu1 %v253_v48 }
  0xcd   :  { %476 = vmatpush3.msra.mxu0 %v253_v48  ;;  %501 = vmatpush3.msra.mxu1 %v253_v48  ;;  %v134_v59 = vadd.f32 %v126_v53, %v82_v55 }
  0xce   :  { %477 = vmatprep.subr.mxu0 %v252_v50  ;;  %494 = vmatprep.subr.mxu1 %v252_v50 }
  0xcf   :  { %v148_v52 = vpop.permute.xlu1 %147  ;;  %478 = vmatpush3.msra.mxu0 %v252_v50  ;;  %502 = vmatpush3.msra.mxu1 %v252_v50 }
  0xd0   :  { %v179_v57 = vmul.f32 %v710_v51, %v148_v52 }
  0xd2   :  { %v187_v63 = vadd.f32 %v179_v57, %v135_v61 }
  0xd3   :  { %v144_v58 = vpop.permute.xlu1 %143 }
  0xd4   :  { %v178_v60 = vmul.f32 %v710_v51, %v144_v58  ;;  %v274_v51 = vpop.permute.xlu0 %273 }
  0xd6   :  { %v186_v62 = vadd.f32 %v178_v60, %v134_v59 }
  0xd8   :  { %v210_v1 = vpop.permute.xlu1 %209  ;;  %v242_v2 = vadd.f32 %v205_v0, %v186_v62  ;;  %v284_v7 = vpop.permute.xlu0 %283 }
  0xd9   :  { %v243_v3 = vadd.f32 %v210_v1, %v187_v63 }
  0xda   :  { %v250_v5 = vmax.f32 %v242_v2, 0.0 }
  0xdb   :  { %v251_v4 = vmax.f32 %v243_v3, 0.0 }
  0xdc   :  { %v269_v47 = vpop.permute.xlu1 %268  ;;  %v400_v18 = vpop.permute.xlu0 %399 }
  0xdd   :  { %479 = vmatprep.subr.mxu0 %v251_v4  ;;  %495 = vmatprep.subr.mxu1 %v251_v4 }
  0xde   :  { %480 = vmatpush3.msra.mxu0 %v251_v4  ;;  %503 = vmatpush3.msra.mxu1 %v251_v4 }
  0xdf   :  { %481 = vmatprep.subr.mxu0 %v250_v5  ;;  %496 = vmatprep.subr.mxu1 %v250_v5 }
  0xe0   :  { %482 = vmatpush3.msra.mxu0 %v250_v5  ;;  %504 = vmatpush3.msra.mxu1 %v250_v5  ;;  %v279_v6 = vpop.permute.xlu1 %278  ;;  %v410_v27 = vpop.permute.xlu0 %409 }
  0xe1   :  { %484 = vmatmul.mubr.msk.f32.vlgmr.msra.gmra.mxu0 %vm286_vm0, %v259_v39  ;;  %487 = vmatmul.mubr.msk.f32.vlgmr.msra.gmra.mxu1 %vm286_vm0, %v261_v45 }
  0xe4   :  { %v395_v10 = vpop.permute.xlu1 %394 }
  0xe8   :  { %v405_v24 = vpop.permute.xlu1 %404 }
  0xec   :  { %v429_v35 = vpop.permute.xlu1 %428 }
  0xed   :  { %v434_v37 = vrot.slane %v429_v35, %v80_v40 }
 0x1a1   :  { %v485_v8 = vpop.f32.mrf.mxu0  ;;  %v488_v9 = vpop.f32.mrf.mxu1 }
 0x1a2   :  { %v371_v11 = vadd.f32 %v485_v8, %v274_v51  ;;  %v381_v15 = vadd.f32 %v488_v9, %v284_v7 }
 0x1a3   :  { %v365_v12 = vpop.f32.mrf.mxu0  ;;  %v375_v13 = vpop.f32.mrf.mxu1 }
 0x1a4   :  { %v385_v14 = vmax.f32 %v371_v11, 0.0  ;;  %v366_v16 = vadd.f32 %v365_v12, %v269_v47  ;;  %v376_v17 = vadd.f32 %v375_v13, %v279_v6  ;;  %v387_v22 = vmax.f32 %v381_v15, 0.0 }
 0x1a6   :  { %v384_v19 = vmax.f32 %v366_v16, 0.0  ;;  %v386_v20 = vmax.f32 %v376_v17, 0.0  ;;  %v413_v21 = vmul.f32 %v400_v18, %v385_v14  ;;  %v415_v28 = vmul.f32 %v410_v27, %v387_v22 }
 0x1a8   :  { %v412_v23 = vmul.f32 %v395_v10, %v384_v19  ;;  %v414_v26 = vmul.f32 %v405_v24, %v386_v20 }
 0x1aa   :  { %v416_v25 = vadd.f32 %v413_v21, %v412_v23 }
 0x1ac   :  { %v417_v29 = vadd.f32 %v416_v25, %v414_v26 }
 0x1ae   :  { %v418_v30 = vadd.f32 %v417_v29, %v415_v28 }
 0x1b0   :  { %v419_v31 = vrot.slane %v418_v30, 4 }
 0x1b2   :  { %v420_v32 = vadd.f32 %v419_v31, %v418_v30 }
 0x1b4   :  { %v421_v33 = vrot.slane %v420_v32, 2 }
 0x1b6   :  { %v422_v34 = vadd.f32 %v421_v33, %v420_v32 }
 0x1b8   :  { %v423_v36 = vrot.slane %v422_v34, 1 }
 0x1ba   :  { %v424_v41 = vadd.f32 %v423_v36, %v422_v34 }
 0x1bc   :  { %v435_v42 = vadd.f32 %v434_v37, %v424_v41 }
 0x1be   :  { %436 = vst [vmem:[#allocation3] sm:$0x1] %v435_v42 }
 0x1bf   :  { %540 = shalt.err (!%p537_p4)
}
 0x1c0   :  { %446 = dma.vmem_to_hbm [thread:$0]  %s444_s30, 16, %s755_s7, [#allocation4]  }
 0x1c1   :  { %549 = dma.done.wait [#allocation4], 16  }
 0x1c2   :  { %550 = vsyncadd [#allocation4], 4294967280 }
 0x1c3   :  { %450 = vsyncpa [#allocation4], 1 }

</bundles_post_ra>
